<compile_context>
chip_gen: v7x
topology: tpu7x:2x2x1
jax: 0.10.0
libtpu: 0.0.40
codegen_flags: <defaults>
</compile_context>

<pallas_src>
import math
from functools import partial

import jax
import jax.numpy as jnp
import numpy as np
from jax import lax
from jax.experimental import pallas as pl
from jax.experimental.pallas import tpu as pltpu


def _fused_phase_kernel(xe_ref, w_ref, b_ref, o_ref, *, W_img, T):
    """One grid step: a T-lane tile of all 4 transposed-conv output phases.

    xe_ref : (Cin, T + W_img + 1)  flat input window (halo / zero tail incl.)
    w_ref  : (4*Cout, 4*Cin)       block-packed phase weights
    b_ref  : (4*Cout, 1)           bias tiled per phase
    o_ref  : (4*Cout, T)           rows = [ee | eo | oe | oo] phase blocks
    """
    j = pl.program_id(0)

    # Four statically shifted views of the flat (r*W + s) input:
    #   x00 -> x[r, s], x01 -> x[r, s+1], x10 -> x[r+1, s], x11 -> x[r+1, s+1]
    x00 = xe_ref[:, pl.ds(0, T)]
    x01 = xe_ref[:, pl.ds(1, T)]
    x10 = xe_ref[:, pl.ds(W_img, T)]
    x11 = xe_ref[:, pl.ds(W_img + 1, T)]

    # Columns s == W-1 must not pick up the row-wrapped x[r+1, 0] value.
    lane = lax.broadcasted_iota(jnp.int32, (1, T), 1) + j * T
    keep = ((lane % W_img) != (W_img - 1)).astype(x00.dtype)
    x01 = x01 * keep
    x11 = x11 * keep

    xs = jnp.concatenate([x00, x01, x10, x11], axis=0)          # (4*Cin, T)

    acc = jnp.dot(w_ref[...], xs, preferred_element_type=jnp.float32)
    acc = acc + b_ref[...]        # per-sublane bias broadcast (free VPU work)
    y = jnp.tanh(acc)             # tanh(flatten(conv))
    y = jnp.maximum(y, 0.0)       # relu; second ReLU is idempotent
    o_ref[...] = jnp.tanh(y)      # final tanh


@partial(jax.jit, static_argnames=("stride", "padding", "output_padding", "K"))
def conv_transpose_model(x_nchw, weight, bias, *, stride=2, padding=1,
                         output_padding=1, K=3):
    """weight in torch ConvTranspose2d layout: (Cin, Cout, K, K)."""
    N, Cin, H, W = x_nchw.shape
    assert N == 1 and stride == 2 and padding == 1 and output_padding == 1 and K == 3
    Cout = weight.shape[1]
    HW = H * W

    # ---- phase-packed weights: (4*Cout, 4*Cin) ------------------------------
    # out[c, 2r,   2s  ] = sum_ci x[ci,r,s]  w[ci,c,1,1]
    # out[c, 2r,   2s+1] = sum_ci x[ci,r,s]  w[ci,c,1,2] + x[ci,r,s+1] w[ci,c,1,0]
    # out[c, 2r+1, 2s  ] = sum_ci x[ci,r,s]  w[ci,c,2,1] + x[ci,r+1,s] w[ci,c,0,1]
    # out[c, 2r+1, 2s+1] = sum_ci x[ci,r,s]  w[ci,c,2,2] + x[ci,r,s+1] w[ci,c,2,0]
    #                            + x[ci,r+1,s] w[ci,c,0,2] + x[ci,r+1,s+1] w[ci,c,0,0]
    def tap(kh, kw):                                   # (Cout, Cin)
        return weight[:, :, kh, kw].T
    Z = jnp.zeros((Cout, Cin), weight.dtype)
    w_ee = jnp.concatenate([tap(1, 1), Z,         Z,         Z],         axis=1)
    w_eo = jnp.concatenate([tap(1, 2), tap(1, 0), Z,         Z],         axis=1)
    w_oe = jnp.concatenate([tap(2, 1), Z,         tap(0, 1), Z],         axis=1)
    w_oo = jnp.concatenate([tap(2, 2), tap(2, 0), tap(0, 2), tap(0, 0)], axis=1)
    w_all = jnp.concatenate([w_ee, w_eo, w_oe, w_oo], axis=0)   # (4*Cout, 4*Cin)
    b_all = jnp.tile(bias, 4).reshape(4 * Cout, 1)

    # ---- lane tile over the flattened (r, s) domain --------------------------
    T = HW
    if HW > 2048:                       # shard across cores / bound VMEM tiles
        t = 2048
        while t >= 128 and HW % t:
            t //= 2
        if t >= 128:
            T = t
    G = HW // T
    Tw = T + W + 1                      # +halo (x[r+1, s+1] tap) / zero tail

    x_flat = x_nchw.reshape(Cin, HW)
    x_ext = jnp.pad(x_flat, ((0, 0), (0, W + 1)))               # (Cin, HW+W+1)
    if G == 1:
        x_blk = x_ext                                           # (Cin, Tw)
    else:
        x_blk = jnp.concatenate(
            [lax.slice_in_dim(x_ext, j * T, j * T + Tw, axis=1) for j in range(G)],
            axis=0)                                             # (G*Cin, Tw)

    kernel = partial(_fused_phase_kernel, W_img=W, T=T)

    out = pl.pallas_call(
        kernel,
        out_shape=jax.ShapeDtypeStruct((4 * Cout, HW), jnp.float32),
        grid=(G,),
        in_specs=[
            pl.BlockSpec((Cin, Tw), lambda j: (j, 0)),
            pl.BlockSpec((4 * Cout, 4 * Cin), lambda j: (0, 0)),
            pl.BlockSpec((4 * Cout, 1), lambda j: (0, 0)),
        ],
        out_specs=pl.BlockSpec((4 * Cout, T), lambda j: (0, j)),
        compiler_params=pltpu.CompilerParams(
            dimension_semantics=("parallel",)),
    )(x_blk, w_all, b_all)

    # (pr, pc, c, r, s) -> (c, 2r+pr, 2s+pc); row-major == torch.flatten order.
    out = out.reshape(2, 2, Cout, H, W).transpose(2, 3, 0, 4, 1)
    return out.reshape(-1)


def reference(x_nchw, weight, bias, *, stride=2, padding=1, output_padding=1, K=3):
    """Pure-JAX (XLA conv) reference of the same forward pass."""
    Cout = weight.shape[1]
    w_conv = jnp.transpose(weight[:, :, ::-1, ::-1], (2, 3, 0, 1))   # HWIO
    lo = K - 1 - padding
    hi = lo + output_padding
    out = lax.conv_general_dilated(
        x_nchw, w_conv,
        window_strides=(1, 1),
        padding=((lo, hi), (lo, hi)),
        lhs_dilation=(stride, stride),
        dimension_numbers=("NCHW", "HWIO", "NCHW"),
        precision=lax.Precision.HIGHEST)
    out = out + bias.reshape(1, Cout, 1, 1)
    v = jnp.tanh(out.reshape(-1))
    v = jnp.maximum(v, 0.0)
    v = jnp.maximum(v, 0.0)
    return jnp.tanh(v)


if __name__ == "__main__":
    Cin = Cout = 16     # fixed by the module
    H = W = 16          # small spatial size
    K = 3

    key = jax.random.PRNGKey(0)
    k1, k2, k3 = jax.random.split(key, 3)
    x = jax.random.normal(k1, (1, Cin, H, W), jnp.float32)

    # Deterministic parameter init (uniform(-bound, bound), like torch default).
    fan_in = Cout * K * K
    bound = 1.0 / math.sqrt(fan_in)
    weight = jax.random.uniform(k2, (Cin, Cout, K, K), jnp.float32, -bound, bound)
    bias = jax.random.uniform(k3, (Cout,), jnp.float32, -bound, bound)

    out = jax.block_until_ready(conv_transpose_model(x, weight, bias))
    ref = jax.block_until_ready(reference(x, weight, bias))

    assert out.shape == (Cout * 2 * H * 2 * W,)
    np.testing.assert_allclose(np.asarray(out), np.asarray(ref), atol=1e-4, rtol=1e-4)
    print("KERNEL_OK")
</pallas_src>

<mosaic_0001>
module attributes {stable_mosaic.version = 11 : i64} {
  func.func @_fused_phase_kernel(%arg0: i32, %arg1: memref<16x273xf32, #tpu.memory_space<vmem>>, %arg2: memref<64x64xf32, #tpu.memory_space<vmem>>, %arg3: memref<64x1xf32, #tpu.memory_space<vmem>>, %arg4: memref<64x256xf32, #tpu.memory_space<vmem>>) attributes {dimension_semantics = [#tpu.dimension_semantics<parallel>], iteration_bounds = array<i64: 1>, scalar_prefetch = 0 : i64, scratch_operands = 0 : i64, tpu.core_type = #tpu.core_type<tc>, window_params = [{transform_indices = @transform_0, window_bounds = array<i64: 16, 273>}, {pipeline_mode = #tpu.pipeline_mode<synchronous>, transform_indices = @transform_1, window_bounds = array<i64: 64, 64>}, {pipeline_mode = #tpu.pipeline_mode<synchronous>, transform_indices = @transform_2, window_bounds = array<i64: 64, 1>}, {transform_indices = @transform_3, window_bounds = array<i64: 64, 256>}]} {
    %c0 = arith.constant 0 : index
    %c0_0 = arith.constant 0 : index
    %0 = vector.load %arg1[%c0, %c0_0] : memref<16x273xf32, #tpu.memory_space<vmem>>, vector<16x256xf32>
    %c0_1 = arith.constant 0 : index
    %c1 = arith.constant 1 : index
    %1 = vector.load %arg1[%c0_1, %c1] : memref<16x273xf32, #tpu.memory_space<vmem>>, vector<16x256xf32>
    %c0_2 = arith.constant 0 : index
    %c16 = arith.constant 16 : index
    %2 = vector.load %arg1[%c0_2, %c16] : memref<16x273xf32, #tpu.memory_space<vmem>>, vector<16x256xf32>
    %c0_3 = arith.constant 0 : index
    %c17 = arith.constant 17 : index
    %3 = vector.load %arg1[%c0_3, %c17] : memref<16x273xf32, #tpu.memory_space<vmem>>, vector<16x256xf32>
    %4 = tpu.iota {dimensions = array<i32: 1>} : vector<1x256xi32>
    %c256_i32 = arith.constant 256 : i32
    %5 = arith.muli %arg0, %c256_i32 : i32
    %6 = vector.broadcast %5 : i32 to vector<1x256xi32>
    %7 = arith.addi %4, %6 : vector<1x256xi32>
    %c16_i32 = arith.constant 16 : i32
    %c0_i32 = arith.constant 0 : i32
    %8 = arith.cmpi eq, %c16_i32, %c0_i32 : i32
    %c1_i32 = arith.constant 1 : i32
    %9 = arith.select %8, %c1_i32, %c16_i32 : i32
    %10 = vector.broadcast %9 : i32 to vector<1x256xi32>
    %11 = arith.remsi %7, %10 : vector<1x256xi32>
    %c0_i32_4 = arith.constant 0 : i32
    %12 = vector.broadcast %c0_i32_4 : i32 to vector<1x256xi32>
    %13 = arith.cmpi ne, %11, %12 : vector<1x256xi32>
    %c0_i32_5 = arith.constant 0 : i32
    %14 = vector.broadcast %c0_i32_5 : i32 to vector<1x256xi32>
    %15 = arith.cmpi slt, %11, %14 : vector<1x256xi32>
    %c0_i32_6 = arith.constant 0 : i32
    %16 = arith.cmpi slt, %9, %c0_i32_6 : i32
    %17 = vector.broadcast %16 : i1 to vector<1x256xi1>
    %18 = vector.broadcast %17 : vector<1x256xi1> to vector<1x256xi1>
    %19 = arith.xori %15, %18 : vector<1x256xi1>
    %20 = arith.andi %19, %13 : vector<1x256xi1>
    %21 = vector.broadcast %9 : i32 to vector<1x256xi32>
    %22 = arith.addi %11, %21 : vector<1x256xi32>
    %23 = arith.select %20, %22, %11 : vector<1x256xi1>, vector<1x256xi32>
    %c15_i32 = arith.constant 15 : i32
    %24 = vector.broadcast %c15_i32 : i32 to vector<1x256xi32>
    %25 = arith.cmpi ne, %23, %24 : vector<1x256xi32>
    %26 = arith.extui %25 : vector<1x256xi1> to vector<1x256xi32>
    %27 = arith.sitofp %26 : vector<1x256xi32> to vector<1x256xf32>
    %28 = vector.broadcast %27 : vector<1x256xf32> to vector<16x256xf32>
    %29 = arith.mulf %1, %28 : vector<16x256xf32>
    %30 = vector.broadcast %27 : vector<1x256xf32> to vector<16x256xf32>
    %31 = arith.mulf %3, %30 : vector<16x256xf32>
    %32 = tpu.concatenate %0, %29, %2, %31 in 0 : vector<16x256xf32>, vector<16x256xf32>, vector<16x256xf32>, vector<16x256xf32> -> vector<64x256xf32>
    %c0_7 = arith.constant 0 : index
    %c0_8 = arith.constant 0 : index
    %33 = vector.load %arg2[%c0_7, %c0_8] : memref<64x64xf32, #tpu.memory_space<vmem>>, vector<64x64xf32>
    %cst = arith.constant dense<0.000000e+00> : vector<64x256xf32>
    %34 = tpu.matmul %33, %32, %cst {dimension_numbers = #tpu.dot_dimension_numbers<[1], [0], [0], [1], [0, 0, 1, 1], [], []>} : vector<64x64xf32>, vector<64x256xf32>, vector<64x256xf32> -> vector<64x256xf32>
    %c0_9 = arith.constant 0 : index
    %c0_10 = arith.constant 0 : index
    %35 = vector.load %arg3[%c0_9, %c0_10] : memref<64x1xf32, #tpu.memory_space<vmem>>, vector<64x1xf32>
    %36 = vector.broadcast %35 : vector<64x1xf32> to vector<64x256xf32>
    %37 = arith.addf %34, %36 : vector<64x256xf32>
    %38 = math.tanh %37 : vector<64x256xf32>
    %cst_11 = arith.constant 0.000000e+00 : f32
    %39 = vector.broadcast %cst_11 : f32 to vector<64x256xf32>
    %40 = arith.maximumf %38, %39 : vector<64x256xf32>
    %41 = math.tanh %40 : vector<64x256xf32>
    %c0_12 = arith.constant 0 : index
    %c0_13 = arith.constant 0 : index
    %42 = vector.load %arg4[%c0_12, %c0_13] : memref<64x256xf32, #tpu.memory_space<vmem>>, vector<64x256xf32>
    tpu.vector_store %arg4[%c0_12, %c0_13], %41 {strides = array<i32>} : memref<64x256xf32, #tpu.memory_space<vmem>>, vector<64x256xf32>,
    return
  }
  func.func @transform_0(%arg0: i32) -> (i32, i32) {
    %c0_i32 = arith.constant 0 : i32
    %c0_i32_0 = arith.constant 0 : i32
    return %arg0, %c0_i32 : i32, i32
  }
  func.func @transform_1(%arg0: i32) -> (i32, i32) {
    %c0_i32 = arith.constant 0 : i32
    %c0_i32_0 = arith.constant 0 : i32
    %c0_i32_1 = arith.constant 0 : i32
    return %c0_i32, %c0_i32_0 : i32, i32
  }
  func.func @transform_2(%arg0: i32) -> (i32, i32) {
    %c0_i32 = arith.constant 0 : i32
    %c0_i32_0 = arith.constant 0 : i32
    %c0_i32_1 = arith.constant 0 : i32
    return %c0_i32, %c0_i32_0 : i32, i32
  }
  func.func @transform_3(%arg0: i32) -> (i32, i32) {
    %c0_i32 = arith.constant 0 : i32
    %c0_i32_0 = arith.constant 0 : i32
    return %c0_i32, %arg0 : i32, i32
  }
}

</mosaic_0001>

<bundles_post_ra>
// kernel: tile.8
= control target key start
LH: loop header
LB: loop body
LE: loop exit
PB: predicated region body
PF: predicated region fallthrough
CT: control target
= control target key end

     0   :  { %2 = vsyncpa [#allocation1], 0  ;;  %s44_s6 = smov [#allocation0]   ;;  %s70_s0 = inlined_call_operand.hbm [shape: f32[16], index: 0, kind: input, shape index: {}]   ;;  %s71_s1 = inlined_call_operand.vmem [shape: f32[4,16], index: 1, kind: output, shape index: {}]  }
   0x1   :  { %s9_s7 = sshll.u32 %s44_s6, 4  ;;  %s20_s10 = scalar_lea.hbm %s70_s0, 16  ;;  %s10_s7 = int_to_ptr.vmem [resolvable:$true] %s9_s7 }
   0x2   :  { %p21_p0 = scmp.ne.s32.totalorder %s70_s0, %s20_s10  ;;  %p24_p1 = scmp.lt.u32.totalorder %s20_s10, %s70_s0 }
   0x4   :  { %p26_p2 = pnand %p24_p1, %p21_p0 }
   0x6   :  { %29 = shalt.err (!%p26_p2)
}
   0x7   :  { %s30_s15 = scalar_lea.vmem %s10_s7, 16  ;;  %s34_s16 = scalar_lea.vmem %s10_s7, 32 }
   0x8   :  { %p31_p3 = scmp.ne.s32.totalorder %s10_s7, %s30_s15  ;;  %p35_p4 = scmp.lt.s32.totalorder %s10_s7, %s10_s7 }
   0x9   :  { %p36_p5 = scmp.lt.s32.totalorder %s34_s16, %s30_s15 }
   0xb   :  { %p37_p6 = por %p36_p5, %p35_p4 }
   0xd   :  { %p38_p7 = pnand %p37_p6, %p31_p3 }
   0xf   :  { %41 = shalt.err (!%p38_p7)
}
  0x10   :  { %12 = dma.hbm_to_vmem [thread:$0]  %s70_s0, 16, %s10_s7, [#allocation1]  }
  0x11   :  { %42 = dma.done.wait [#allocation1], 16  }
  0x12   :  { %43 = vsyncadd [#allocation1], 4294967280  ;;  %v16_v0 = vld [vmem:[#allocation0] ss:$0 sm:$0xff] }
  0x13   :  { %17 = vst [vmem:[%s71_s1] sm:$0xf] %v16_v0 }
  0x14   :  { %18 = vsyncpa [#allocation1], 1 }

// kernel: tile.0
= control target key start
LH: loop header
LB: loop body
LE: loop exit
PB: predicated region body
PF: predicated region fallthrough
CT: control target
= control target key end

     0   :  { %s176_s8 = smov 125   ;;  %s177_s9 = smov 126   ;;  %vm7_vm0 = vcmask 7168   ;;  %s331_s0 = inlined_call_operand.vmem [shape: f32[4,16], index: 0, kind: input, shape index: {}]   ;;  %s332_s1 = inlined_call_operand.vmem [shape: f32[64,1], index: 1, kind: output, shape index: {}]  }
   0x1   :  { %v4_v0 = vld [vmem:[%s331_s0] sm:$0xf]  ;;  %s175_s0 = smov 127   ;;  %s178_s10 = smov 124  }
   0x2   :  { %5 = vst [vmem:[#allocation0] sm:$0xf] %v4_v0  ;;  %s179_s11 = smov 123   ;;  %s180_s12 = smov 122  }
   0x3   :  { %s181_s13 = smov 121   ;;  %s182_s14 = smov 120  }
   0x4   :  { %s183_s19 = smov 119   ;;  %s184_s20 = smov 118  }
   0x5   :  { %s185_s21 = smov 117   ;;  %s186_s22 = smov 116  }
   0x6   :  { %s187_s23 = smov 115   ;;  %s188_s24 = smov 114  }
   0x7   :  { %s189_s25 = smov 113  }
   0x9   :  { %v10_v1 = vld [vmem:[#allocation0] sm:$0xf]  }
   0xa   :  { %v26_v2 = vld [vmem:[#allocation0] sm:$0xf]   ;;  %11 = vrot.lane.b32.xlu0 %v10_v1, %s175_s0 }
   0xb   :  { %27 = vrot.lane.b32.xlu1 %v26_v2, %s176_s8  ;;  %v18_v3 = vld [vmem:[#allocation0] sm:$0xf]  }
   0xc   :  { %v34_v4 = vld [vmem:[#allocation0] sm:$0xf]  }
   0xd   :  { %v42_v5 = vld [vmem:[#allocation0] sm:$0xf]  }
   0xe   :  { %19 = vrot.lane.b32.xlu0 %v18_v3, %s177_s9  ;;  %v50_v6 = vld [vmem:[#allocation0] sm:$0xf]  }
   0xf   :  { %35 = vrot.lane.b32.xlu1 %v34_v4, %s178_s10  ;;  %v58_v7 = vld [vmem:[#allocation0] sm:$0xf]  }
  0x10   :  { %v66_v8 = vld [vmem:[#allocation0] sm:$0xf]  }
  0x11   :  { %v74_v9 = vld [vmem:[#allocation0] sm:$0xf]  }
  0x12   :  { %43 = vrot.lane.b32.xlu0 %v42_v5, %s179_s11  ;;  %v82_v10 = vld [vmem:[#allocation0] sm:$0xf]  }
  0x13   :  { %51 = vrot.lane.b32.xlu1 %v50_v6, %s180_s12  ;;  %v6_v11 = vld [vmem:[#allocation0] sm:$0xf]  }
  0x14   :  { %8 = vst.msk [vmem:[%s332_s1] ss:$16 sm:$0x3] %vm7_vm0, %v6_v11   ;;  %9 = vst.msk [vmem:[%s332_s1] ss:$16 sm:$0xc] %vm7_vm0, %v6_v11  }
  0x15   :  { %v90_v12 = vld [vmem:[#allocation0] sm:$0xf]  }
  0x16   :  { %59 = vrot.lane.b32.xlu0 %v58_v7, %s181_s13  ;;  %v98_v13 = vld [vmem:[#allocation0] sm:$0xf]  }
  0x17   :  { %67 = vrot.lane.b32.xlu1 %v66_v8, %s182_s14  ;;  %v106_v14 = vld [vmem:[#allocation0] sm:$0xf]  }
  0x18   :  { %v114_v15 = vld [vmem:[#allocation0] sm:$0xf]  }
  0x19   :  { %v122_v16 = vld [vmem:[#allocation0] sm:$0xf]  }
  0x1a   :  { %75 = vrot.lane.b32.xlu0 %v74_v9, %s183_s19 }
  0x1b   :  { %83 = vrot.lane.b32.xlu1 %v82_v10, %s184_s20 }
  0x1e   :  { %91 = vrot.lane.b32.xlu0 %v90_v12, %s185_s21 }
  0x1f   :  { %99 = vrot.lane.b32.xlu1 %v98_v13, %s186_s22 }
  0x22   :  { %107 = vrot.lane.b32.xlu0 %v106_v14, %s187_s23 }
  0x23   :  { %115 = vrot.lane.b32.xlu1 %v114_v15, %s188_s24 }
  0x26   :  { %123 = vrot.lane.b32.xlu0 %v122_v16, %s189_s25 }
  0x7c   :  { %v12_v17 = vpop.permute.xlu0 %11  }
  0x7d   :  { %v28_v18 = vpop.permute.xlu1 %27   ;;  %130 = vst.msk [vmem:[%s332_s1 + $0x1] ss:$16 sm:$0x3] %vm7_vm0, %v12_v17   ;;  %131 = vst.msk [vmem:[%s332_s1 + $0x1] ss:$16 sm:$0xc] %vm7_vm0, %v12_v17  }
  0x7e   :  { %134 = vst.msk [vmem:[%s332_s1 + $0x3] ss:$16 sm:$0x3] %vm7_vm0, %v28_v18   ;;  %135 = vst.msk [vmem:[%s332_s1 + $0x3] ss:$16 sm:$0xc] %vm7_vm0, %v28_v18  }
  0x80   :  { %v20_v19 = vpop.permute.xlu0 %19  }
  0x81   :  { %v36_v20 = vpop.permute.xlu1 %35   ;;  %132 = vst.msk [vmem:[%s332_s1 + $0x2] ss:$16 sm:$0x3] %vm7_vm0, %v20_v19   ;;  %133 = vst.msk [vmem:[%s332_s1 + $0x2] ss:$16 sm:$0xc] %vm7_vm0, %v20_v19  }
  0x82   :  { %136 = vst.msk [vmem:[%s332_s1 + $0x4] ss:$16 sm:$0x3] %vm7_vm0, %v36_v20   ;;  %137 = vst.msk [vmem:[%s332_s1 + $0x4] ss:$16 sm:$0xc] %vm7_vm0, %v36_v20  }
  0x84   :  { %v44_v21 = vpop.permute.xlu0 %43  }
  0x85   :  { %v52_v22 = vpop.permute.xlu1 %51   ;;  %138 = vst.msk [vmem:[%s332_s1 + $0x5] ss:$16 sm:$0x3] %vm7_vm0, %v44_v21   ;;  %139 = vst.msk [vmem:[%s332_s1 + $0x5] ss:$16 sm:$0xc] %vm7_vm0, %v44_v21  }
  0x86   :  { %140 = vst.msk [vmem:[%s332_s1 + $0x6] ss:$16 sm:$0x3] %vm7_vm0, %v52_v22   ;;  %141 = vst.msk [vmem:[%s332_s1 + $0x6] ss:$16 sm:$0xc] %vm7_vm0, %v52_v22  }
  0x88   :  { %v60_v23 = vpop.permute.xlu0 %59  }
  0x89   :  { %v68_v24 = vpop.permute.xlu1 %67   ;;  %142 = vst.msk [vmem:[%s332_s1 + $0x7] ss:$16 sm:$0x3] %vm7_vm0, %v60_v23   ;;  %143 = vst.msk [vmem:[%s332_s1 + $0x7] ss:$16 sm:$0xc] %vm7_vm0, %v60_v23  }
  0x8a   :  { %144 = vst.msk [vmem:[%s332_s1 + $0x8] ss:$16 sm:$0x3] %vm7_vm0, %v68_v24   ;;  %145 = vst.msk [vmem:[%s332_s1 + $0x8] ss:$16 sm:$0xc] %vm7_vm0, %v68_v24  }
  0x8c   :  { %v76_v25 = vpop.permute.xlu0 %75  }
  0x8d   :  { %v84_v26 = vpop.permute.xlu1 %83   ;;  %146 = vst.msk [vmem:[%s332_s1 + $0x9] ss:$16 sm:$0x3] %vm7_vm0, %v76_v25   ;;  %147 = vst.msk [vmem:[%s332_s1 + $0x9] ss:$16 sm:$0xc] %vm7_vm0, %v76_v25  }
  0x8e   :  { %148 = vst.msk [vmem:[%s332_s1 + $0xa] ss:$16 sm:$0x3] %vm7_vm0, %v84_v26   ;;  %149 = vst.msk [vmem:[%s332_s1 + $0xa] ss:$16 sm:$0xc] %vm7_vm0, %v84_v26  }
  0x90   :  { %v92_v27 = vpop.permute.xlu0 %91  }
  0x91   :  { %v100_v28 = vpop.permute.xlu1 %99   ;;  %150 = vst.msk [vmem:[%s332_s1 + $0xb] ss:$16 sm:$0x3] %vm7_vm0, %v92_v27   ;;  %151 = vst.msk [vmem:[%s332_s1 + $0xb] ss:$16 sm:$0xc] %vm7_vm0, %v92_v27  }
  0x92   :  { %152 = vst.msk [vmem:[%s332_s1 + $0xc] ss:$16 sm:$0x3] %vm7_vm0, %v100_v28   ;;  %153 = vst.msk [vmem:[%s332_s1 + $0xc] ss:$16 sm:$0xc] %vm7_vm0, %v100_v28  }
  0x94   :  { %v108_v29 = vpop.permute.xlu0 %107  }
  0x95   :  { %v116_v30 = vpop.permute.xlu1 %115   ;;  %154 = vst.msk [vmem:[%s332_s1 + $0xd] ss:$16 sm:$0x3] %vm7_vm0, %v108_v29   ;;  %155 = vst.msk [vmem:[%s332_s1 + $0xd] ss:$16 sm:$0xc] %vm7_vm0, %v108_v29  }
  0x96   :  { %156 = vst.msk [vmem:[%s332_s1 + $0xe] ss:$16 sm:$0x3] %vm7_vm0, %v116_v30   ;;  %157 = vst.msk [vmem:[%s332_s1 + $0xe] ss:$16 sm:$0xc] %vm7_vm0, %v116_v30  }
  0x98   :  { %v124_v31 = vpop.permute.xlu0 %123  }
  0x99   :  { %158 = vst.msk [vmem:[%s332_s1 + $0xf] ss:$16 sm:$0x3] %vm7_vm0, %v124_v31   ;;  %159 = vst.msk [vmem:[%s332_s1 + $0xf] ss:$16 sm:$0xc] %vm7_vm0, %v124_v31  }

// kernel: conv_transpose_model.1
= control target key start
LH: loop header
LB: loop body
LE: loop exit
PB: predicated region body
PF: predicated region fallthrough
CT: control target
= control target key end

     0   :  { %v20_v0 = vlaneseq  ;;  %v594_v2 = vmov 0.0   ;;  %s595_s16 = smov 112   ;;  %s596_s17 = smov 1   ;;  %vm63_vm2 = vcmask 7168   ;;  %vm78_vm3 = vcmask 138240   ;;  %s764_s0 = inlined_call_operand.vmem [shape: f32[16,273], index: 0, kind: input, shape index: {}]   ;;  %s765_s2 = inlined_call_operand.vmem [shape: f32[64,1], index: 2, kind: input, shape index: {}]   ;;  %s766_s1 = inlined_call_operand.vmem [shape: f32[64,64], index: 1, kind: input, shape index: {}]   ;;  %s767_s3 = inlined_call_operand.vmem [shape: f32[64,256], index: 3, kind: output, shape index: {}]  }
   0x1   :  { %v15_v1 = vld [vmem:[%s764_s0 + $0x8] sm:$0xff]  ;;  %315 = vmatprep.mubr.f32.mxu0 %v594_v2  ;;  %339 = vmatprep.mubr.f32.mxu1 %v594_v2  ;;  %v18_v4 = vld [vmem:[%s764_s0 + $0x10] sm:$0xff]  ;;  %v17_v12 = vld [vmem:[%s764_s0 + $0x20] sm:$0xff]  ;;  %s597_s22 = smov 17   ;;  %s599_s27 = smov 111   ;;  %v600_v46 = vmov 0  }
   0x2   :  { %v21_v3 = vand.u32 127, %v20_v0  ;;  %v483_v5 = vpack.i.bf16 %v18_v4, %v15_v1  ;;  %v19_v13 = vld [vmem:[%s764_s0 + $0x28] sm:$0xff]  ;;  %v14_v15 = vld [vmem:[%s764_s0] sm:$0xff]  ;;  %v16_v16 = vld [vmem:[%s764_s0 + $0x18] sm:$0xff]  ;;  %v442_v17 = vpack.c.bf16 %v17_v12, %v15_v1  ;;  %s598_s0 = smov 127   ;;  %528 = vset.pattern.permute.xlu1 %v600_v46  ;;  %529 = vset.pattern.permute.xlu0 %v600_v46  ;;  %vm134_vm4 = vcmask 916480  }
   0x3   :  { %v488_v14 = vpack.i.bf16 %v19_v13, %v17_v12  ;;  %v444_v18 = vpack.c.bf16 %v16_v16, %v14_v15  ;;  %v508_v41 = vpack.i.bf16 %v16_v16, %v14_v15  ;;  %v178_v47 = vld [vmem:[%s765_s2] sm:$0xff]  ;;  %v179_v48 = vld [vmem:[%s765_s2 + $0x8] sm:$0xff]  ;;  %v180_v49 = vld [vmem:[%s765_s2 + $0x10] sm:$0xff]  ;;  %vm107_vm5 = vcmask 1039360  }
   0x4   :  { %v22_v6 = vadd.s32 128, %v21_v3  ;;  %v31_v7 = vand.u32 15, %v21_v3  ;;  %484 = vrot.lane.b32.xlu1 %v483_v5, %s595_s16  ;;  %443 = vmatprep.subr.bf16.mxu0 %v442_v17  ;;  %v182_v50 = vld [vmem:[%s765_s2 + $0x20] sm:$0xff]  ;;  %v181_v51 = vld [vmem:[%s765_s2 + $0x18] sm:$0xff]  ;;  %v184_v52 = vld [vmem:[%s765_s2 + $0x30] sm:$0xff]  ;;  %vm161_vm6 = vcmask 908288  }
   0x5   :  { %458 = vmatprep.subr.bf16.mxu1 %v442_v17  ;;  %445 = vmatpush1.bf16.msra.mxu0 %v444_v18  ;;  %v183_v53 = vld [vmem:[%s765_s2 + $0x28] sm:$0xff]  ;;  %v185_v54 = vld [vmem:[%s765_s2 + $0x38] sm:$0xff]  ;;  %vm226_vm7 = vcmask 523264  }
   0x6   :  { %v38_v8 = vand.u32 15, %v22_v6  ;;  %vm51_vm0 = vcmp.ne.s32.totalorder %v31_v7, 15  ;;  %462 = vmatpush1.bf16.msra.mxu1 %v444_v18 }
   0x7   :  { %v432_v9 = vsel %vm51_vm0, 1.0, %v594_v2 }
   0x8   :  { %vm52_vm1 = vcmp.ne.s32.totalorder %v38_v8, 15 }
   0x9   :  { %v433_v10 = vsel %vm52_vm1, 1.0, %v594_v2 }
   0xa   :  { %v473_v11 = vpack.i.bf16 %v433_v10, %v432_v9 }
   0xc   :  { %474 = vrot.lane.b32.xlu0 %v473_v11, %s596_s17 }
  0x10   :  { %479 = vrot.lane.b32.xlu0 %v473_v11, %s597_s22 }
  0x14   :  { %489 = vrot.lane.b32.xlu0 %v488_v14, %s595_s16 }
  0x76   :  { %v485_v56 = vpop.permute.xlu1 %484 }
  0x77   :  { %v487_v61 = vunpack.i.h.bf16 %v485_v56  ;;  %v486_v62 = vunpack.i.l.bf16 %v485_v56 }
  0x79   :  { %v136_v8 = vsel %vm134_vm4, %v486_v62, %v487_v61 }
  0x7e   :  { %v475_v19 = vpop.permute.xlu0 %474 }
  0x7f   :  { %v477_v20 = vunpack.i.h.bf16 %v475_v19  ;;  %v476_v21 = vunpack.i.l.bf16 %v475_v19 }
  0x81   :  { %v64_v22 = vsel %vm63_vm2, %v476_v21, %v477_v20  ;;  %v68_v23 = vmul.f32 %v476_v21, %v14_v15  ;;  %v71_v24 = vmul.f32 %v476_v21, %v16_v16  ;;  %v70_v25 = vmul.f32 %v477_v20, %v18_v4 }
  0x82   :  { %v480_v26 = vpop.permute.xlu0 %479  ;;  %v69_v27 = vmul.f32 %v64_v22, %v15_v1  ;;  %v72_v32 = vmul.f32 %v64_v22, %v17_v12  ;;  %v73_v33 = vmul.f32 %v477_v20, %v19_v13 }
  0x83   :  { %v482_v28 = vunpack.i.h.bf16 %v480_v26  ;;  %v481_v29 = vunpack.i.l.bf16 %v480_v26  ;;  %v493_v30 = vpack.i.bf16 %v71_v24, %v68_v23 }
  0x84   :  { %v498_v31 = vpack.i.bf16 %v70_v25, %v69_v27  ;;  %v503_v39 = vpack.i.bf16 %v73_v33, %v72_v32 }
  0x85   :  { %v79_v34 = vsel %vm78_vm3, %v481_v29, %v482_v28  ;;  %494 = vrot.lane.b32.xlu0 %v493_v30, %s598_s0  ;;  %v85_v35 = vmul.f32 %v482_v28, %v18_v4  ;;  %v83_v37 = vmul.f32 %v481_v29, %v14_v15  ;;  %v86_v38 = vmul.f32 %v481_v29, %v16_v16 }
  0x86   :  { %499 = vrot.lane.b32.xlu1 %v498_v31, %s598_s0  ;;  %v84_v36 = vmul.f32 %v79_v34, %v15_v1  ;;  %v87_v43 = vmul.f32 %v79_v34, %v17_v12  ;;  %v88_v44 = vmul.f32 %v482_v28, %v19_v13  ;;  %v490_v55 = vpop.permute.xlu0 %489 }
  0x87   :  { %v523_v42 = vpack.i.bf16 %v86_v38, %v83_v37  ;;  %v492_v59 = vunpack.i.h.bf16 %v490_v55  ;;  %v491_v60 = vunpack.i.l.bf16 %v490_v55  ;;  %v170_v37 = vld [vmem:[%s766_s1] sm:$0xff] }
  0x88   :  { %v513_v40 = vpack.i.bf16 %v85_v35, %v84_v36  ;;  %v518_v45 = vpack.i.bf16 %v88_v44, %v87_v43  ;;  %v174_v38 = vld [vmem:[%s766_s1 + $0x20] sm:$0xff]  ;;  %v173_v43 = vld [vmem:[%s766_s1 + $0x18] sm:$0xff] }
  0x89   :  { %v138_v9 = vsel %vm134_vm4, %v491_v60, %v492_v59  ;;  %v177_v44 = vld [vmem:[%s766_s1 + $0x38] sm:$0xff] }
  0x8a   :  { %504 = vrot.lane.b32.xlu1 %v503_v39, %s598_s0  ;;  %514 = vrot.lane.b32.xlu0 %v513_v40, %s599_s27  ;;  %v450_v22 = vpack.c.bf16 %v138_v9, %v136_v8  ;;  %v171_v39 = vld [vmem:[%s766_s1 + $0x8] sm:$0xff] }
  0x8b   :  { %v175_v40 = vld [vmem:[%s766_s1 + $0x28] sm:$0xff] }
  0x8e   :  { %509 = vrot.lane.b32.xlu1 %v508_v41, %s595_s16  ;;  %524 = vrot.lane.b32.xlu0 %v523_v42, %s599_s27  ;;  %v172_v41 = vld [vmem:[%s766_s1 + $0x10] sm:$0xff] }
  0x8f   :  { %v176_v42 = vld [vmem:[%s766_s1 + $0x30] sm:$0xff] }
  0x92   :  { %519 = vrot.lane.b32.xlu1 %v518_v45, %s599_s27  ;;  %193 = vperm.xlu0 %529, %v179_v48  }
  0x96   :  { %188 = vperm.xlu1 %528, %v178_v47   ;;  %208 = vperm.xlu0 %529, %v182_v50  }
  0x9a   :  { %198 = vperm.xlu1 %528, %v180_v49   ;;  %218 = vperm.xlu0 %529, %v184_v52  }
  0x9e   :  { %203 = vperm.xlu1 %528, %v181_v51  }
  0xa2   :  { %213 = vperm.xlu1 %528, %v183_v53  }
  0xa6   :  { %223 = vperm.xlu1 %528, %v185_v54  }
  0xf7   :  { %v495_v57 = vpop.permute.xlu0 %494 }
  0xf8   :  { %v500_v58 = vpop.permute.xlu1 %499  ;;  %v496_v63 = vunpack.i.l.bf16 %v495_v57  ;;  %v497_v5 = vunpack.i.h.bf16 %v495_v57 }
  0xf9   :  { %v502_v0 = vunpack.i.h.bf16 %v500_v58  ;;  %v501_v1 = vunpack.i.l.bf16 %v500_v58 }
  0xfb   :  { %v109_v10 = vsel %vm107_vm5, %v501_v1, %v502_v0  ;;  %v108_v12 = vsel %vm107_vm5, %v496_v63, %v501_v1 }
  0xfc   :  { %v505_v3 = vpop.permute.xlu1 %504  ;;  %v515_v4 = vpop.permute.xlu0 %514 }
  0xfd   :  { %v507_v6 = vunpack.i.h.bf16 %v505_v3  ;;  %v506_v7 = vunpack.i.l.bf16 %v505_v3  ;;  %v517_v20 = vunpack.i.h.bf16 %v515_v4  ;;  %v516_v21 = vunpack.i.l.bf16 %v515_v4 }
  0xff   :  { %v111_v11 = vsel %vm107_vm5, %v506_v7, %v507_v6  ;;  %v110_v13 = vsel %vm107_vm5, %v497_v5, %v506_v7  ;;  %v163_v31 = vsel %vm161_vm6, %v516_v21, %v517_v20 }
 0x100   :  { %v510_v14 = vpop.permute.xlu1 %509  ;;  %v525_v15 = vpop.permute.xlu0 %524  ;;  %v446_v16 = vpack.c.bf16 %v111_v11, %v109_v10  ;;  %v448_v17 = vpack.c.bf16 %v110_v13, %v108_v12 }
 0x101   :  { %v512_v18 = vunpack.i.h.bf16 %v510_v14  ;;  %v511_v19 = vunpack.i.l.bf16 %v510_v14  ;;  %v526_v23 = vunpack.i.l.bf16 %v525_v15  ;;  %v527_v28 = vunpack.i.h.bf16 %v525_v15 }
 0x102   :  { %447 = vmatprep.subr.bf16.mxu0 %v446_v16  ;;  %459 = vmatprep.subr.bf16.mxu1 %v446_v16 }
 0x103   :  { %449 = vmatpush1.bf16.msra.mxu0 %v448_v17  ;;  %463 = vmatpush1.bf16.msra.mxu1 %v448_v17  ;;  %v135_v24 = vsel %vm134_vm4, %v511_v19, %v486_v62  ;;  %v137_v25 = vsel %vm134_vm4, %v512_v18, %v491_v60  ;;  %v162_v33 = vsel %vm161_vm6, %v526_v23, %v516_v21 }
 0x104   :  { %v520_v26 = vpop.permute.xlu1 %519  ;;  %451 = vmatprep.subr.bf16.mxu0 %v450_v22  ;;  %460 = vmatprep.subr.bf16.mxu1 %v450_v22  ;;  %v452_v27 = vpack.c.bf16 %v137_v25, %v135_v24 }
 0x105   :  { %v522_v29 = vunpack.i.h.bf16 %v520_v26  ;;  %v521_v30 = vunpack.i.l.bf16 %v520_v26 }
 0x107   :  { %453 = vmatpush1.bf16.msra.mxu0 %v452_v27  ;;  %464 = vmatpush1.bf16.msra.mxu1 %v452_v27  ;;  %v165_v32 = vsel %vm161_vm6, %v521_v30, %v522_v29  ;;  %v164_v34 = vsel %vm161_vm6, %v527_v28, %v521_v30 }
 0x108   :  { %v454_v35 = vpack.c.bf16 %v165_v32, %v163_v31  ;;  %v456_v36 = vpack.c.bf16 %v164_v34, %v162_v33 }
 0x10a   :  { %455 = vmatprep.subr.bf16.mxu0 %v454_v35  ;;  %461 = vmatprep.subr.bf16.mxu1 %v454_v35 }
 0x10b   :  { %457 = vmatpush1.bf16.msra.mxu0 %v456_v36  ;;  %465 = vmatpush1.bf16.msra.mxu1 %v456_v36 }
 0x10e   :  { %434 = vmatmul.mubr.msk.f32.vlgmr.msra.gmra.mrb[0].mxu0 %vm226_vm7, %v170_v37  ;;  %438 = vmatmul.mubr.msk.f32.vlgmr.msra.gmra.mrb[0].mxu1 %vm226_vm7, %v174_v38 }
 0x10f   :  { %321 = vmatprep.mubr.f32.mxu0 %v594_v2  ;;  %345 = vmatprep.mubr.f32.mxu1 %v594_v2 }
 0x111   :  { %v194_v47 = vpop.permute.xlu0 %193 }
 0x112   :  { %435 = vmatmul.mubr.msk.f32.gmra.mrb[2].mxu0 %vm226_vm7, %v171_v39  ;;  %439 = vmatmul.mubr.msk.f32.gmra.mrb[2].mxu1 %vm226_vm7, %v175_v40 }
 0x113   :  { %327 = vmatprep.mubr.f32.mxu0 %v594_v2  ;;  %351 = vmatprep.mubr.f32.mxu1 %v594_v2 }
 0x115   :  { %v189_v45 = vpop.permute.xlu1 %188  ;;  %v209_v49 = vpop.permute.xlu0 %208 }
 0x116   :  { %436 = vmatmul.mubr.msk.f32.gmra.mrb[4].mxu0 %vm226_vm7, %v172_v41  ;;  %440 = vmatmul.mubr.msk.f32.gmra.mrb[4].mxu1 %vm226_vm7, %v176_v42 }
 0x117   :  { %333 = vmatprep.mubr.f32.mxu0 %v594_v2  ;;  %357 = vmatprep.mubr.f32.mxu1 %v594_v2 }
 0x119   :  { %v199_v46 = vpop.permute.xlu1 %198  ;;  %v219_v3 = vpop.permute.xlu0 %218 }
 0x11a   :  { %437 = vmatmul.mubr.msk.f32.gmra.mrb[6].mxu0 %vm226_vm7, %v173_v43  ;;  %441 = vmatmul.mubr.msk.f32.gmra.mrb[6].mxu1 %vm226_vm7, %v177_v44 }
 0x11d   :  { %v712_v48 = vpop.permute.xlu1 %203 }
 0x121   :  { %v214_v57 = vpop.permute.xlu1 %213 }
 0x125   :  { %v224_v39 = vpop.permute.xlu1 %223 }
 0x1e1   :  { %v317_v50 = vpop.f32.mrb[0].mxu0  ;;  %v341_v2 = vpop.f32.mrb[0].mxu1 }
 0x1e2   :  { %v318_v51 = vadd.f32 %v317_v50, %v189_v45  ;;  %v342_v52 = vadd.f32 %v341_v2, %v209_v49  ;;  %v319_v53 = vpop.f32.mrb[1].mxu0  ;;  %v343_v54 = vpop.f32.mrb[1].mxu1 }
 0x1e3   :  { %v320_v55 = vadd.f32 %v319_v53, %v189_v45  ;;  %v344_v56 = vadd.f32 %v343_v54, %v209_v49 }
 0x1e4   :  { %530 = vtanh.f32 %v318_v51 }
 0x1e5   :  { %532 = vtanh.f32 %v342_v52  ;;  %v323_v58 = vpop.f32.mrb[2].mxu0  ;;  %v347_v59 = vpop.f32.mrb[2].mxu1 }
 0x1e6   :  { %534 = vtanh.f32 %v320_v55  ;;  %v324_v60 = vadd.f32 %v323_v58, %v194_v47  ;;  %v348_v61 = vadd.f32 %v347_v59, %v214_v57  ;;  %v325_v62 = vpop.f32.mrb[3].mxu0  ;;  %v349_v63 = vpop.f32.mrb[3].mxu1 }
 0x1e7   :  { %536 = vtanh.f32 %v344_v56  ;;  %v326_v0 = vadd.f32 %v325_v62, %v194_v47  ;;  %v350_v1 = vadd.f32 %v349_v63, %v214_v57 }
 0x1e8   :  { %538 = vtanh.f32 %v324_v60 }
 0x1e9   :  { %540 = vtanh.f32 %v348_v61  ;;  %v329_v4 = vpop.f32.mrb[4].mxu0  ;;  %v353_v5 = vpop.f32.mrb[4].mxu1 }
 0x1ea   :  { %542 = vtanh.f32 %v326_v0  ;;  %v330_v6 = vadd.f32 %v329_v4, %v199_v46  ;;  %v354_v7 = vadd.f32 %v353_v5, %v219_v3  ;;  %v331_v8 = vpop.f32.mrb[5].mxu0  ;;  %v355_v9 = vpop.f32.mrb[5].mxu1 }
 0x1eb   :  { %544 = vtanh.f32 %v350_v1  ;;  %v332_v10 = vadd.f32 %v331_v8, %v199_v46  ;;  %v356_v11 = vadd.f32 %v355_v9, %v219_v3 }
 0x1ec   :  { %546 = vtanh.f32 %v330_v6 }
 0x1ed   :  { %548 = vtanh.f32 %v354_v7  ;;  %v335_v12 = vpop.f32.mrb[6].mxu0  ;;  %v359_v13 = vpop.f32.mrb[6].mxu1 }
 0x1ee   :  { %v531_v14 = vpop.eup %530  ;;  %550 = vtanh.f32 %v332_v10  ;;  %v336_v15 = vadd.f32 %v335_v12, %v712_v48  ;;  %v337_v16 = vpop.f32.mrb[7].mxu0  ;;  %v360_v43 = vadd.f32 %v359_v13, %v224_v39 }
 0x1ef   :  { %v361_v17 = vpop.f32.mrb[7].mxu1  ;;  %v533_v18 = vpop.eup %532  ;;  %v380_v19 = vmax.f32 %v531_v14, 0.0  ;;  %552 = vtanh.f32 %v356_v11  ;;  %v338_v46 = vadd.f32 %v337_v16, %v712_v48 }
 0x1f0   :  { %v535_v20 = vpop.eup %534  ;;  %v388_v21 = vmax.f32 %v533_v18, 0.0  ;;  %554 = vtanh.f32 %v336_v15  ;;  %v362_v49 = vadd.f32 %v361_v17, %v224_v39 }
 0x1f1   :  { %v537_v22 = vpop.eup %536  ;;  %556 = vtanh.f32 %v380_v19  ;;  %v381_v23 = vmax.f32 %v535_v20, 0.0 }
 0x1f2   :  { %v539_v24 = vpop.eup %538  ;;  %558 = vtanh.f32 %v388_v21  ;;  %v389_v25 = vmax.f32 %v537_v22, 0.0 }
 0x1f3   :  { %v541_v26 = vpop.eup %540  ;;  %560 = vtanh.f32 %v381_v23  ;;  %v382_v27 = vmax.f32 %v539_v24, 0.0 }
 0x1f4   :  { %v543_v28 = vpop.eup %542  ;;  %562 = vtanh.f32 %v389_v25  ;;  %v390_v29 = vmax.f32 %v541_v26, 0.0 }
 0x1f5   :  { %v545_v30 = vpop.eup %544  ;;  %564 = vtanh.f32 %v382_v27  ;;  %v383_v31 = vmax.f32 %v543_v28, 0.0 }
 0x1f6   :  { %v547_v32 = vpop.eup %546  ;;  %566 = vtanh.f32 %v390_v29  ;;  %v391_v33 = vmax.f32 %v545_v30, 0.0 }
 0x1f7   :  { %v549_v34 = vpop.eup %548  ;;  %568 = vtanh.f32 %v383_v31  ;;  %v384_v35 = vmax.f32 %v547_v32, 0.0 }
 0x1f8   :  { %v551_v36 = vpop.eup %550  ;;  %570 = vtanh.f32 %v391_v33  ;;  %v392_v37 = vmax.f32 %v549_v34, 0.0 }
 0x1f9   :  { %v553_v38 = vpop.eup %552  ;;  %572 = vtanh.f32 %v384_v35  ;;  %v385_v40 = vmax.f32 %v551_v36, 0.0 }
 0x1fa   :  { %v555_v41 = vpop.eup %554  ;;  %574 = vtanh.f32 %v392_v37  ;;  %v393_v42 = vmax.f32 %v553_v38, 0.0 }
 0x1fb   :  { %v557_v44 = vpop.eup %556  ;;  %576 = vtanh.f32 %v385_v40  ;;  %v386_v45 = vmax.f32 %v555_v41, 0.0 }
 0x1fc   :  { %v559_v47 = vpop.eup %558  ;;  %412 = vst [vmem:[%s767_s3] sm:$0xff] %v557_v44  ;;  %578 = vtanh.f32 %v393_v42 }
 0x1fd   :  { %v561_v50 = vpop.eup %560  ;;  %420 = vst [vmem:[%s767_s3 + $0x40] sm:$0xff] %v559_v47  ;;  %580 = vtanh.f32 %v386_v45 }
 0x1fe   :  { %v563_v2 = vpop.eup %562  ;;  %413 = vst [vmem:[%s767_s3 + $0x8] sm:$0xff] %v561_v50  ;;  %582 = vtanh.f32 %v360_v43 }
 0x1ff   :  { %v565_v48 = vpop.eup %564  ;;  %421 = vst [vmem:[%s767_s3 + $0x48] sm:$0xff] %v563_v2  ;;  %584 = vtanh.f32 %v338_v46 }
 0x200   :  { %v567_v51 = vpop.eup %566  ;;  %414 = vst [vmem:[%s767_s3 + $0x10] sm:$0xff] %v565_v48  ;;  %586 = vtanh.f32 %v362_v49 }
 0x201   :  { %v569_v52 = vpop.eup %568  ;;  %422 = vst [vmem:[%s767_s3 + $0x50] sm:$0xff] %v567_v51 }
 0x202   :  { %v571_v53 = vpop.eup %570  ;;  %415 = vst [vmem:[%s767_s3 + $0x18] sm:$0xff] %v569_v52 }
 0x203   :  { %v573_v54 = vpop.eup %572  ;;  %423 = vst [vmem:[%s767_s3 + $0x58] sm:$0xff] %v571_v53 }
 0x204   :  { %v575_v55 = vpop.eup %574  ;;  %416 = vst [vmem:[%s767_s3 + $0x20] sm:$0xff] %v573_v54 }
 0x205   :  { %v577_v56 = vpop.eup %576  ;;  %424 = vst [vmem:[%s767_s3 + $0x60] sm:$0xff] %v575_v55 }
 0x206   :  { %v579_v57 = vpop.eup %578  ;;  %417 = vst [vmem:[%s767_s3 + $0x28] sm:$0xff] %v577_v56 }
 0x207   :  { %v581_v58 = vpop.eup %580  ;;  %425 = vst [vmem:[%s767_s3 + $0x68] sm:$0xff] %v579_v57 }
 0x208   :  { %v583_v59 = vpop.eup %582  ;;  %418 = vst [vmem:[%s767_s3 + $0x30] sm:$0xff] %v581_v58 }
 0x209   :  { %v585_v60 = vpop.eup %584  ;;  %v394_v61 = vmax.f32 %v583_v59, 0.0 }
 0x20a   :  { %v587_v62 = vpop.eup %586  ;;  %v387_v63 = vmax.f32 %v585_v60, 0.0 }
 0x20b   :  { %588 = vtanh.f32 %v394_v61  ;;  %v395_v0 = vmax.f32 %v587_v62, 0.0 }
 0x20c   :  { %590 = vtanh.f32 %v387_v63 }
 0x20d   :  { %592 = vtanh.f32 %v395_v0 }
 0x215   :  { %v589_v1 = vpop.eup %588 }
 0x216   :  { %v591_v3 = vpop.eup %590  ;;  %426 = vst [vmem:[%s767_s3 + $0x70] sm:$0xff] %v589_v1 }
 0x217   :  { %v593_v4 = vpop.eup %592  ;;  %419 = vst [vmem:[%s767_s3 + $0x38] sm:$0xff] %v591_v3 }
 0x218   :  { %427 = vst [vmem:[%s767_s3 + $0x78] sm:$0xff] %v593_v4 }

</bundles_post_ra>
